<compile_context>
chip_gen: v7x
topology: tpu7x:2x2x1
jax: 0.10.0
libtpu: 0.0.40
codegen_flags: <defaults>
</compile_context>

<pallas_src>
import jax
import jax.numpy as jnp
from jax.experimental import pallas as pl
from jax.experimental.pallas import tpu as pltpu


def _round_up(x, m):
    return ((x + m - 1) // m) * m


def gat_attention_kernel(s_dst_ref, s_src_ref, z_src_ref, out_ref,
                         m_sc, l_sc, acc_sc):
    k = pl.program_id(1)

    @pl.when(k == 0)
    def _init():
        m_sc[...] = jnp.full_like(m_sc, -1e30)
        l_sc[...] = jnp.zeros_like(l_sc)
        acc_sc[...] = jnp.zeros_like(acc_sc)

    # Edge scores in dst-major layout; padded src columns already carry -1e30
    # in s_src, so no per-step mask is needed.
    e = s_dst_ref[...] + s_src_ref[...]            # [Td,1] + [1,Ts] -> [Td,Ts]
    e = jnp.where(e > 0, e, 0.01 * e)              # leaky_relu (slope 0.01)

    # Online softmax over the src (lane) axis.
    m_new = jnp.maximum(m_sc[...], jnp.max(e, axis=-1, keepdims=True))
    corr = jnp.exp(m_sc[...] - m_new)
    p = jnp.exp(e - m_new)                         # [Td, Ts], f32
    l_sc[...] = corr * l_sc[...] + jnp.sum(p, axis=-1, keepdims=True)
    # bf16 MXU operands, f32 accumulation.
    acc_sc[...] = corr * acc_sc[...] + jnp.dot(
        p.astype(jnp.bfloat16), z_src_ref[...],
        preferred_element_type=jnp.float32)        # [Td, Dp]
    m_sc[...] = m_new

    @pl.when(k == pl.num_programs(1) - 1)
    def _finalize():
        out_ref[...] = (acc_sc[...] *
                        pl.reciprocal(l_sc[...], approx=True)
                        ).astype(out_ref.dtype)


def gat_forward(h_src, h_dst, w_src, w_dst, a_vec,
                *, max_tile_ns=1024, max_tile_nd=256):
    n_src, in_dim = h_src.shape
    n_dst, _ = h_dst.shape
    out_dim = w_src.shape[0]

    h_src = h_src.astype(jnp.float32)
    h_dst = h_dst.astype(jnp.float32)
    w_src_t = jnp.asarray(w_src, jnp.float32).T             # [in_dim, out_dim]
    a_src = a_vec[0, :out_dim].astype(jnp.float32)          # [out_dim]
    a_dst = a_vec[0, out_dim:].astype(jnp.float32)          # [out_dim]

    # Projections hoisted to XLA (one GEMM + two GEMVs); z_dst eliminated
    # algebraically:  a_dst . (W_dst h_dst) == h_dst . (W_dst^T a_dst).
    z_src = h_src @ w_src_t                                  # [n_src, out_dim]
    s_src = z_src @ a_src                                    # [n_src]
    s_dst = h_dst @ (jnp.asarray(w_dst, jnp.float32).T @ a_dst)  # [n_dst]

    # Lane-dense tiling: src tiles and the feature dim are 128-aligned.
    d_pad = _round_up(out_dim, 128)
    tile_ns = min(_round_up(n_src, 128), max_tile_ns)
    ns_pad = _round_up(n_src, tile_ns)
    # Aim for >= 2 dst tiles when possible (v7x megacore), sublane-aligned.
    tile_nd = min(_round_up(max((n_dst + 1) // 2, 1), 8), max_tile_nd)
    nd_pad = _round_up(n_dst, tile_nd)
    n_dst_tiles = nd_pad // tile_nd
    n_src_tiles = ns_pad // tile_ns

    # Padded operands.  Padded src columns of s_src carry -1e30 so their
    # softmax weight underflows to exactly zero; padded z_src rows/cols are 0.
    z_src_p = jnp.zeros((ns_pad, d_pad), jnp.bfloat16)
    z_src_p = z_src_p.at[:n_src, :out_dim].set(z_src.astype(jnp.bfloat16))
    s_src_p = jnp.full((1, ns_pad), -1e30, jnp.float32)
    s_src_p = s_src_p.at[0, :n_src].set(s_src)
    s_dst_p = jnp.zeros((nd_pad, 1), jnp.float32)
    s_dst_p = s_dst_p.at[:n_dst, 0].set(s_dst)

    flops = 2 * nd_pad * ns_pad * d_pad + 8 * nd_pad * ns_pad
    transcendentals = nd_pad * ns_pad + nd_pad * n_src_tiles
    bytes_accessed = (n_dst_tiles * (2 * ns_pad * d_pad + 4 * ns_pad)
                      + 4 * nd_pad + 4 * nd_pad * d_pad)
    cost = pl.CostEstimate(flops=flops, transcendentals=transcendentals,
                           bytes_accessed=bytes_accessed)

    out = pl.pallas_call(
        gat_attention_kernel,
        out_shape=jax.ShapeDtypeStruct((nd_pad, d_pad), jnp.float32),
        grid=(n_dst_tiles, n_src_tiles),
        in_specs=[
            pl.BlockSpec((tile_nd, 1), lambda j, k: (j, 0)),       # s_dst col
            pl.BlockSpec((1, tile_ns), lambda j, k: (0, k)),       # s_src row
            pl.BlockSpec((tile_ns, d_pad), lambda j, k: (k, 0)),   # z_src
        ],
        out_specs=pl.BlockSpec((tile_nd, d_pad), lambda j, k: (j, 0)),
        scratch_shapes=[
            pltpu.VMEM((tile_nd, 1), jnp.float32),       # running max
            pltpu.VMEM((tile_nd, 1), jnp.float32),       # running sum
            pltpu.VMEM((tile_nd, d_pad), jnp.float32),   # accumulator
        ],
        compiler_params=pltpu.CompilerParams(
            dimension_semantics=("parallel", "arbitrary"),
            # Explicit VMEM budget: safe on v7x (64 MiB physical) and well
            # above what the double-buffered blocks + scratch need here.
            vmem_limit_bytes=32 * 1024 * 1024),
        cost_estimate=cost,
    )(s_dst_p, s_src_p, z_src_p)

    return out[:n_dst, :out_dim]


def gat_reference(h_src, h_dst, w_src, w_dst, a_vec):
    out_dim = w_src.shape[0]
    z_src = h_src @ w_src.T
    z_dst = h_dst @ w_dst.T
    s_src = z_src @ a_vec[0, :out_dim]
    s_dst = z_dst @ a_vec[0, out_dim:]
    e = s_src[:, None] + s_dst[None, :]
    e = jnp.where(e > 0, e, 0.01 * e)
    alpha = jax.nn.softmax(e, axis=0)
    return alpha.T @ z_src


def xavier_normal(key, shape, gain):
    fan_out, fan_in = shape
    std = gain * jnp.sqrt(2.0 / (fan_in + fan_out))
    return std * jax.random.normal(key, shape, dtype=jnp.float32)


if __name__ == "__main__":
    in_dim, out_dim = 32, 32
    n_src, n_dst = 16, 8

    key = jax.random.PRNGKey(0)
    k1, k2, k3, k4, k5 = jax.random.split(key, 5)

    gain = jnp.sqrt(2.0)  # nn.init.calculate_gain('relu')
    w_src = xavier_normal(k1, (out_dim, in_dim), gain)       # fc_src.weight
    w_dst = xavier_normal(k2, (out_dim, in_dim), gain)       # fc_dst.weight
    a_vec = xavier_normal(k3, (1, 2 * out_dim), gain)        # attn_fc.weight

    h_src = jax.random.normal(k4, (n_src, in_dim), dtype=jnp.float32)
    h_dst = jax.random.normal(k5, (n_dst, in_dim), dtype=jnp.float32)

    out = jax.block_until_ready(gat_forward(h_src, h_dst, w_src, w_dst, a_vec))
    ref = gat_reference(h_src, h_dst, w_src, w_dst, a_vec)

    assert out.shape == (n_dst, out_dim)
    # bf16 MXU operands + EUP approx reciprocal -> ~1e-2 tolerance vs pure f32.
    assert jnp.allclose(out, ref, atol=2e-2, rtol=1e-2), \
        f"max abs diff {jnp.max(jnp.abs(out - ref))}"
    print("KERNEL_OK")
</pallas_src>

<mosaic_0001>
module attributes {stable_mosaic.version = 11 : i64} {
  func.func @gat_attention_kernel(%arg0: i32, %arg1: i32, %arg2: memref<8x1xf32, #tpu.memory_space<vmem>>, %arg3: memref<1x128xf32, #tpu.memory_space<vmem>>, %arg4: memref<128x128xbf16, #tpu.memory_space<vmem>>, %arg5: memref<8x128xf32, #tpu.memory_space<vmem>>, %arg6: memref<8x1xf32, #tpu.memory_space<vmem>>, %arg7: memref<8x1xf32, #tpu.memory_space<vmem>>, %arg8: memref<8x128xf32, #tpu.memory_space<vmem>>) attributes {dimension_semantics = [#tpu.dimension_semantics<parallel>, #tpu.dimension_semantics<arbitrary>], iteration_bounds = array<i64: 1, 1>, scalar_prefetch = 0 : i64, scratch_operands = 3 : i64, tpu.core_type = #tpu.core_type<tc>, window_params = [{transform_indices = @transform_0, window_bounds = array<i64: 8, 1>}, {transform_indices = @transform_1, window_bounds = array<i64: 1, 128>}, {transform_indices = @transform_2, window_bounds = array<i64: 128, 128>}, {transform_indices = @transform_3, window_bounds = array<i64: 8, 128>}]} {
    %c0_i32 = arith.constant 0 : i32
    %0 = arith.cmpi eq, %arg1, %c0_i32 : i32
    %1 = arith.extui %0 : i1 to i32
    %c0_i32_0 = arith.constant 0 : i32
    %2 = arith.cmpi ne, %1, %c0_i32_0 : i32
    scf.if %2 {
      %cst_26 = arith.constant -1.000000e+30 : f32
      %41 = vector.broadcast %cst_26 : f32 to vector<8x1xf32>
      %c0_27 = arith.constant 0 : index
      %c0_28 = arith.constant 0 : index
      %42 = vector.load %arg6[%c0_27, %c0_28] : memref<8x1xf32, #tpu.memory_space<vmem>>, vector<8x1xf32>
      tpu.vector_store %arg6[%c0_27, %c0_28], %41 {strides = array<i32>} : memref<8x1xf32, #tpu.memory_space<vmem>>, vector<8x1xf32>,
      %cst_29 = arith.constant 0.000000e+00 : f32
      %43 = vector.broadcast %cst_29 : f32 to vector<8x1xf32>
      %c0_30 = arith.constant 0 : index
      %c0_31 = arith.constant 0 : index
      %44 = vector.load %arg7[%c0_30, %c0_31] : memref<8x1xf32, #tpu.memory_space<vmem>>, vector<8x1xf32>
      tpu.vector_store %arg7[%c0_30, %c0_31], %43 {strides = array<i32>} : memref<8x1xf32, #tpu.memory_space<vmem>>, vector<8x1xf32>,
      %cst_32 = arith.constant 0.000000e+00 : f32
      %45 = vector.broadcast %cst_32 : f32 to vector<8x128xf32>
      %c0_33 = arith.constant 0 : index
      %c0_34 = arith.constant 0 : index
      %46 = vector.load %arg8[%c0_33, %c0_34] : memref<8x128xf32, #tpu.memory_space<vmem>>, vector<8x128xf32>
      tpu.vector_store %arg8[%c0_33, %c0_34], %45 {strides = array<i32>} : memref<8x128xf32, #tpu.memory_space<vmem>>, vector<8x128xf32>,
    } else {
    }
    %c0 = arith.constant 0 : index
    %c0_1 = arith.constant 0 : index
    %3 = vector.load %arg2[%c0, %c0_1] : memref<8x1xf32, #tpu.memory_space<vmem>>, vector<8x1xf32>
    %c0_2 = arith.constant 0 : index
    %c0_3 = arith.constant 0 : index
    %4 = vector.load %arg3[%c0_2, %c0_3] : memref<1x128xf32, #tpu.memory_space<vmem>>, vector<1x128xf32>
    %5 = vector.broadcast %3 : vector<8x1xf32> to vector<8x128xf32>
    %6 = vector.broadcast %4 : vector<1x128xf32> to vector<8x128xf32>
    %7 = arith.addf %5, %6 : vector<8x128xf32>
    %cst = arith.constant 0.000000e+00 : f32
    %8 = vector.broadcast %cst : f32 to vector<8x128xf32>
    %9 = arith.cmpf ogt, %7, %8 : vector<8x128xf32>
    %cst_4 = arith.constant 0.00999999977 : f32
    %10 = vector.broadcast %cst_4 : f32 to vector<8x128xf32>
    %11 = arith.mulf %10, %7 : vector<8x128xf32>
    %12 = arith.select %9, %7, %11 : vector<8x128xi1>, vector<8x128xf32>
    %c0_5 = arith.constant 0 : index
    %c0_6 = arith.constant 0 : index
    %13 = vector.load %arg6[%c0_5, %c0_6] : memref<8x1xf32, #tpu.memory_space<vmem>>, vector<8x1xf32>
    %cst_7 = arith.constant dense<0xFF800000> : vector<8xf32>
    %14 = vector.multi_reduction <maximumf>, %12, %cst_7 [1] : vector<8x128xf32> to vector<8xf32>
    %15 = vector.shape_cast %14 : vector<8xf32> to vector<8x1xf32>
    %16 = arith.maximumf %13, %15 : vector<8x1xf32>
    %c0_8 = arith.constant 0 : index
    %c0_9 = arith.constant 0 : index
    %17 = vector.load %arg6[%c0_8, %c0_9] : memref<8x1xf32, #tpu.memory_space<vmem>>, vector<8x1xf32>
    %18 = arith.subf %17, %16 : vector<8x1xf32>
    %19 = math.exp %18 : vector<8x1xf32>
    %20 = vector.broadcast %16 : vector<8x1xf32> to vector<8x128xf32>
    %21 = arith.subf %12, %20 : vector<8x128xf32>
    %22 = math.exp %21 : vector<8x128xf32>
    %c0_10 = arith.constant 0 : index
    %c0_11 = arith.constant 0 : index
    %23 = vector.load %arg7[%c0_10, %c0_11] : memref<8x1xf32, #tpu.memory_space<vmem>>, vector<8x1xf32>
    %24 = arith.mulf %19, %23 : vector<8x1xf32>
    %cst_12 = arith.constant dense<0.000000e+00> : vector<8xf32>
    %25 = vector.multi_reduction <add>, %22, %cst_12 [1] : vector<8x128xf32> to vector<8xf32>
    %26 = vector.shape_cast %25 : vector<8xf32> to vector<8x1xf32>
    %27 = arith.addf %24, %26 : vector<8x1xf32>
    %c0_13 = arith.constant 0 : index
    %c0_14 = arith.constant 0 : index
    %28 = vector.load %arg7[%c0_13, %c0_14] : memref<8x1xf32, #tpu.memory_space<vmem>>, vector<8x1xf32>
    tpu.vector_store %arg7[%c0_13, %c0_14], %27 {strides = array<i32>} : memref<8x1xf32, #tpu.memory_space<vmem>>, vector<8x1xf32>,
    %c0_15 = arith.constant 0 : index
    %c0_16 = arith.constant 0 : index
    %29 = vector.load %arg8[%c0_15, %c0_16] : memref<8x128xf32, #tpu.memory_space<vmem>>, vector<8x128xf32>
    %30 = vector.broadcast %19 : vector<8x1xf32> to vector<8x128xf32>
    %31 = arith.mulf %30, %29 : vector<8x128xf32>
    %32 = arith.truncf %22 : vector<8x128xf32> to vector<8x128xbf16>
    %c0_17 = arith.constant 0 : index
    %c0_18 = arith.constant 0 : index
    %33 = vector.load %arg4[%c0_17, %c0_18] : memref<128x128xbf16, #tpu.memory_space<vmem>>, vector<128x128xbf16>
    %cst_19 = arith.constant dense<0.000000e+00> : vector<8x128xf32>
    %34 = tpu.matmul %32, %33, %cst_19 {dimension_numbers = #tpu.dot_dimension_numbers<[1], [0], [0], [1], [0, 0, 1, 1], [], []>} : vector<8x128xbf16>, vector<128x128xbf16>, vector<8x128xf32> -> vector<8x128xf32>
    %35 = arith.addf %31, %34 : vector<8x128xf32>
    %c0_20 = arith.constant 0 : index
    %c0_21 = arith.constant 0 : index
    %36 = vector.load %arg8[%c0_20, %c0_21] : memref<8x128xf32, #tpu.memory_space<vmem>>, vector<8x128xf32>
    tpu.vector_store %arg8[%c0_20, %c0_21], %35 {strides = array<i32>} : memref<8x128xf32, #tpu.memory_space<vmem>>, vector<8x128xf32>,
    %c0_22 = arith.constant 0 : index
    %c0_23 = arith.constant 0 : index
    %37 = vector.load %arg6[%c0_22, %c0_23] : memref<8x1xf32, #tpu.memory_space<vmem>>, vector<8x1xf32>
    tpu.vector_store %arg6[%c0_22, %c0_23], %16 {strides = array<i32>} : memref<8x1xf32, #tpu.memory_space<vmem>>, vector<8x1xf32>,
    %c0_i32_24 = arith.constant 0 : i32
    %38 = arith.cmpi eq, %arg1, %c0_i32_24 : i32
    %39 = arith.extui %38 : i1 to i32
    %c0_i32_25 = arith.constant 0 : i32
    %40 = arith.cmpi ne, %39, %c0_i32_25 : i32
    scf.if %40 {
      %c0_26 = arith.constant 0 : index
      %c0_27 = arith.constant 0 : index
      %41 = vector.load %arg8[%c0_26, %c0_27] : memref<8x128xf32, #tpu.memory_space<vmem>>, vector<8x128xf32>
      %c0_28 = arith.constant 0 : index
      %c0_29 = arith.constant 0 : index
      %42 = vector.load %arg7[%c0_28, %c0_29] : memref<8x1xf32, #tpu.memory_space<vmem>>, vector<8x1xf32>
      %43 = tpu.reciprocal %42 {approx = true} : vector<8x1xf32> -> vector<8x1xf32>
      %44 = vector.broadcast %43 : vector<8x1xf32> to vector<8x128xf32>
      %45 = arith.mulf %41, %44 : vector<8x128xf32>
      %c0_30 = arith.constant 0 : index
      %c0_31 = arith.constant 0 : index
      %46 = vector.load %arg5[%c0_30, %c0_31] : memref<8x128xf32, #tpu.memory_space<vmem>>, vector<8x128xf32>
      tpu.vector_store %arg5[%c0_30, %c0_31], %45 {strides = array<i32>} : memref<8x128xf32, #tpu.memory_space<vmem>>, vector<8x128xf32>,
    } else {
    }
    return
  }
  func.func @transform_0(%arg0: i32, %arg1: i32) -> (i32, i32) {
    %c0_i32 = arith.constant 0 : i32
    %c0_i32_0 = arith.constant 0 : i32
    return %arg0, %c0_i32 : i32, i32
  }
  func.func @transform_1(%arg0: i32, %arg1: i32) -> (i32, i32) {
    %c0_i32 = arith.constant 0 : i32
    %c0_i32_0 = arith.constant 0 : i32
    return %c0_i32, %arg1 : i32, i32
  }
  func.func @transform_2(%arg0: i32, %arg1: i32) -> (i32, i32) {
    %c0_i32 = arith.constant 0 : i32
    %c0_i32_0 = arith.constant 0 : i32
    return %arg1, %c0_i32 : i32, i32
  }
  func.func @transform_3(%arg0: i32, %arg1: i32) -> (i32, i32) {
    %c0_i32 = arith.constant 0 : i32
    %c0_i32_0 = arith.constant 0 : i32
    return %arg0, %c0_i32 : i32, i32
  }
}

</mosaic_0001>

<bundles_post_ra>
// kernel: tpu_custom_call.1
= control target key start
LH: loop header
LB: loop body
LE: loop exit
PB: predicated region body
PF: predicated region fallthrough
CT: control target
= control target key end

     0   :  { %8 = vsyncpa [#allocation6], 0  ;;  %s392_s0 = inlined_call_operand.vmem [shape: f32[8,1], index: 0, kind: input, shape index: {}]   ;;  %s393_s1 = inlined_call_operand.vmem [shape: f32[1,128], index: 1, kind: input, shape index: {}]   ;;  %s394_s2 = inlined_call_operand.hbm [shape: bf16[128,128], index: 2, kind: input, shape index: {}]   ;;  %s395_s3 = inlined_call_operand.hbm [shape: f32[8,128], index: 3, kind: output, shape index: {}]  }
   0x1   :  { %9 = vsyncpa [#allocation7], 0  ;;  %s330_s12 = smov [#allocation5]   ;;  %s282_s16 = scalar_lea.hbm %s394_s2, 1024 }
   0x2   :  { %s19_s13 = sshll.u32 %s330_s12, 4  ;;  %p283_p0 = scmp.ne.s32.totalorder %s394_s2, %s282_s16  ;;  %s20_s13 = int_to_ptr.vmem [resolvable:$true] %s19_s13 }
   0x3   :  { %p286_p1 = scmp.lt.u32.totalorder %s282_s16, %s394_s2 }
   0x5   :  { %p288_p2 = pnand %p286_p1, %p283_p0 }
   0x7   :  { %291 = shalt.err (!%p288_p2)
}
   0x8   :  { %s292_s21 = scalar_lea.vmem %s20_s13, 1024  ;;  %p297_p4 = scmp.lt.s32.totalorder %s20_s13, %s20_s13 }
   0x9   :  { %p293_p3 = scmp.ne.s32.totalorder %s20_s13, %s292_s21  ;;  %p298_p5 = scmp.lt.s32.totalorder %s292_s21, %s292_s21 }
   0xb   :  { %p299_p6 = por %p298_p5, %p297_p4 }
   0xd   :  { %p300_p7 = pnand %p299_p6, %p293_p3 }
   0xf   :  { %303 = shalt.err (!%p300_p7)
}
  0x10   :  { %s331_s22 = smov 64   ;;  %s332_s23 = smov 4  }
  0x11   :  { %25 = dma.hbm_to_vmem [thread:$0]  %s394_s2, 1024, %s20_s13, [#allocation6], %s331_s22, %s331_s22, %s332_s23  }
  0x12   :  { %326 = dma.done.wait [#allocation6], 1024  }
  0x13   :  { %327 = vsyncadd [#allocation6], 4294966272  ;;  %v333_v0 = vmov 0   ;;  %v38_v1 = vld [vmem:[%s392_s0] sm:$0xff]  ;;  %vm34_vm0 = vcmask 7168   ;;  %v335_v8 = vmov 0.0  }
  0x14   :  { %266 = vset.pattern.permute.xlu0 %v333_v0  ;;  %267 = vset.pattern.permute.xlu1 %v333_v0  ;;  %v334_v2 = vmov -1e+30   ;;  %v220_v3 = vld [vmem:[%s393_s1] ss:$0 sm:$0xff]  ;;  %36 = vst.msk [vmem:[#allocation3] sm:$0xff] %vm34_vm0, %v335_v8  ;;  %v268_v9 = vld [vmem:[#allocation5] sm:$0xff]  }
  0x15   :  { %42 = vperm.xlu0 %266, %v38_v1   ;;  %35 = vst.msk [vmem:[#allocation2] sm:$0xff] %vm34_vm0, %v334_v2  ;;  %238 = vmatprep.subr.bf16.mxu0 %v335_v8  ;;  %v269_v10 = vld [vmem:[#allocation5 + $0x8] sm:$0xff]   ;;  %v270_v11 = vld [vmem:[#allocation5 + $0x10] sm:$0xff]   ;;  %v271_v12 = vld [vmem:[#allocation5 + $0x18] sm:$0xff]   ;;  %vm336_vm2 = vmmov 0   ;;  %s337_s0 = smov [#allocation8]  }
  0x16   :  { %239 = vmatpush3.bf16.msra.mxu0 %v268_v9  ;;  %v272_v17 = vld [vmem:[#allocation5 + $0x20] sm:$0xff]   ;;  %v273_v19 = vld [vmem:[#allocation5 + $0x28] sm:$0xff]   ;;  %v274_v20 = vld [vmem:[#allocation5 + $0x30] sm:$0xff]   ;;  %254 = vmatprep.mubr.msk.bf16.mxu0 %vm336_vm2, %v335_v8  ;;  %s211_s1 = sshll.u32 %s337_s0, 4  ;;  %s212_s1 = int_to_ptr.vmem [resolvable:$true] %s211_s1 }
  0x17   :  { %240 = vmatprep.subr.bf16.mxu0 %v335_v8  ;;  %v275_v21 = vld [vmem:[#allocation5 + $0x38] sm:$0xff]   ;;  %s304_s2 = scalar_lea.vmem %s212_s1, 128  ;;  %p309_p9 = scmp.lt.s32.totalorder %s212_s1, %s212_s1 }
  0x18   :  { %p305_p8 = scmp.ne.s32.totalorder %s212_s1, %s304_s2  ;;  %p310_p10 = scmp.lt.s32.totalorder %s304_s2, %s304_s2 }
  0x1a   :  { %241 = vmatpush3.bf16.msra.mxu0 %v269_v10  ;;  %p311_p11 = por %p310_p10, %p309_p9 }
  0x1b   :  { %242 = vmatprep.subr.bf16.mxu0 %v335_v8  ;;  %v70_v28 = vld [vmem:[#allocation3] sm:$0xff] }
  0x1c   :  { %v55_v13 = vld [vmem:[#allocation2] sm:$0xff]  ;;  %p312_p12 = pnand %p311_p11, %p305_p8 }
  0x1e   :  { %243 = vmatpush3.bf16.msra.mxu0 %v270_v11 }
  0x1f   :  { %244 = vmatprep.subr.bf16.mxu0 %v335_v8 }
  0x22   :  { %245 = vmatpush3.bf16.msra.mxu0 %v271_v12 }
  0x23   :  { %246 = vmatprep.subr.bf16.mxu0 %v335_v8 }
  0x26   :  { %247 = vmatpush3.bf16.msra.mxu0 %v272_v17 }
  0x27   :  { %248 = vmatprep.subr.bf16.mxu0 %v335_v8 }
  0x2a   :  { %249 = vmatpush3.bf16.msra.mxu0 %v273_v19 }
  0x2b   :  { %250 = vmatprep.subr.bf16.mxu0 %v335_v8 }
  0x2e   :  { %251 = vmatpush3.bf16.msra.mxu0 %v274_v20 }
  0x2f   :  { %252 = vmatprep.subr.bf16.mxu0 %v335_v8 }
  0x32   :  { %253 = vmatpush3.bf16.msra.mxu0 %v275_v21 }
  0x94   :  { %v43_v4 = vpop.permute.xlu0 %42 }
  0x95   :  { %v51_v5 = vadd.f32 %v220_v3, %v43_v4 }
  0x97   :  { %vm52_vm1 = vcmp.gt.f32.partialorder %v51_v5, 0.0  ;;  %v53_v6 = vmul.f32 0.01, %v51_v5 }
  0x99   :  { %v54_v7 = vsel %vm52_vm1, %v51_v5, %v53_v6 }
  0x9a   :  { %56 = vmax.xlane.f32.xlu0 %v54_v7 }
 0x127   :  { %v57_v14 = vpop.xlane.xlu0 %56 }
 0x128   :  { %v58_v15 = vmax.f32 %v55_v13, %v57_v14 }
 0x12a   :  { %v59_v16 = vsub.f32 %v55_v13, %v58_v15  ;;  %191 = vst.msk [vmem:[#allocation2] sm:$0xff] %vm34_vm0, %v58_v15  ;;  %64 = vperm.xlu1 %267, %v58_v15  }
 0x12c   :  { %v60_v18 = vmul.f32 1.442695, %v59_v16 }
 0x12e   :  { %276 = vpow2.f32 %v60_v18 }
 0x138   :  { %v277_v22 = vpop.eup %276 }
 0x139   :  { %80 = vperm.xlu0 %266, %v277_v22   ;;  %v71_v29 = vmul.f32 %v277_v22, %v70_v28 }
 0x1a9   :  { %v65_v23 = vpop.permute.xlu1 %64 }
 0x1aa   :  { %v67_v24 = vsub.f32 %v54_v7, %v65_v23 }
 0x1ac   :  { %v68_v25 = vmul.f32 1.442695, %v67_v24 }
 0x1ae   :  { %278 = vpow2.f32 %v68_v25 }
 0x1b8   :  { %v279_v26 = vpop.eup %278  ;;  %v81_v38 = vpop.permute.xlu0 %80 }
 0x1b9   :  { %72 = vadd.xlane.f32.xlu1 %v279_v26  ;;  %v84_v27 = vpack.c.bf16 %v279_v26, %v279_v26  ;;  %v83_v39 = vmul.f32 0.0, %v81_v38 }
 0x1bb   :  { %255 = vmatmul.mubr.bf16.vlgmr.msra.gmra.mrb[0].mxu0 %v84_v27 }
 0x246   :  { %v73_v30 = vpop.xlane.xlu1 %72 }
 0x247   :  { %v74_v31 = vadd.f32 %v73_v30, %v71_v29 }
 0x249   :  { %76 = vst.msk [vmem:[#allocation3] sm:$0xff] %vm34_vm0, %v74_v31 }
 0x250   :  { %v196_v32 = vld [vmem:[#allocation3] sm:$0xff] }
 0x251   :  { %280 = vrcp.f32 %v196_v32 }
 0x25b   :  { %v281_v33 = vpop.eup %280 }
 0x25c   :  { %200 = vperm.xlu1 %267, %v281_v33  }
 0x28e   :  { %v183_v34 = vpop.f32.mrb[0].mxu0 }
 0x28f   :  { %v256_v35 = vpop.f32.mrb[1].mxu0  ;;  %v189_v40 = vadd.f32 %v183_v34, %v83_v39 }
 0x290   :  { %v186_v36 = vpop.f32.mrb[2].mxu0 }
 0x291   :  { %v257_v37 = vpop.f32.mrb[3].mxu0 }
 0x2db   :  { %v201_v41 = vpop.permute.xlu1 %200 }
 0x2dc   :  { %v203_v42 = vmul.f32 %v201_v41, %v189_v40 }
 0x2de   :  { %204 = vst [vmem:[#allocation8] sm:$0xff] %v203_v42 }
 0x2df   :  { %315 = shalt.err (!%p312_p12)
}
 0x2e0   :  { %s316_s5 = scalar_lea.hbm %s395_s3, 128 }
 0x2e1   :  { %p317_p13 = scmp.ne.s32.totalorder %s395_s3, %s316_s5  ;;  %p320_p0 = scmp.lt.u32.totalorder %s316_s5, %s395_s3 }
 0x2e3   :  { %p322_p1 = pnand %p320_p0, %p317_p13 }
 0x2e5   :  { %325 = shalt.err (!%p322_p1)
}
 0x2e6   :  { %214 = dma.vmem_to_hbm [thread:$0]  %s212_s1, 128, %s395_s3, [#allocation7]  }
 0x2e7   :  { %328 = dma.done.wait [#allocation7], 128  }
 0x2e8   :  { %329 = vsyncadd [#allocation7], 4294967168 }
 0x2e9   :  { %218 = vsyncpa [#allocation6], 1 }
 0x2ea   :  { %219 = vsyncpa [#allocation7], 1 }

</bundles_post_ra>
